<compile_context>
chip_gen: v5e
topology: v5e:2x2
jax: 0.10.0
libtpu: 0.0.40
codegen_flags: <defaults>
</compile_context>

<pallas_src>
import functools

import jax
import jax.numpy as jnp
from jax import lax
from jax.experimental import pallas as pl
from jax.experimental.pallas import tpu as pltpu

LANE = 128
SUBLANE = 8
CHUNK_ROWS = 512                      # rows per in-kernel accumulation chunk
NUM_CORE_SPLITS = 2                   # leading "parallel" axis (v7x: 2 TCs)
TARGET_BLOCK_BYTES = 4 * 1024 * 1024  # per input, per grid step
VMEM_LIMIT_BYTES = 32 * 1024 * 1024
PENALTY = 18.0
THRESHOLD = -300.0


def _round_up(x, m):
    return ((x + m - 1) // m) * m


def _loss_kernel(pred_ref, actual_ref, sum_ref, min_ref, *,
                 rows_total, block_rows, chunk_rows, num_chunks,
                 steps_per_core, needs_mask):
    c = pl.program_id(0)   # TensorCore split (parallel)
    i = pl.program_id(1)   # row-block step within this core (arbitrary)

    @pl.when(i == 0)
    def _():
        sum_ref[...] = jnp.zeros_like(sum_ref)
        min_ref[...] = jnp.full_like(min_ref, jnp.inf)

    # Logical (unclamped) row-block handled by this step.  The block actually
    # DMA'd may be the clamped last block when the logical one is fully past
    # the end of the slab; `valid_rows` then masks every row's contribution.
    logical_block = c * steps_per_core + i
    valid_rows = rows_total - logical_block * block_rows

    if needs_mask:
        row_iota = lax.broadcasted_iota(jnp.int32, (chunk_rows, LANE), 0)

    def body(k, carry):
        start = pl.multiple_of(k * chunk_rows, chunk_rows)
        # Stream native dtype; do arithmetic in f32.
        p = pred_ref[pl.ds(start, chunk_rows), :].astype(jnp.float32)
        a = actual_ref[pl.ds(start, chunk_rows), :].astype(jnp.float32)
        d = p - a
        sq = d * d
        if needs_mask:
            in_range = (row_iota + start) < valid_rows
            sq = jnp.where(in_range, sq, 0.0)       # masked rows: no SSE
            p = jnp.where(in_range, p, jnp.inf)     # masked rows: no min
        # Fold (chunk_rows, 128) -> (chunk_rows//8, 8, 128) and reduce the
        # leading axis: pure elementwise VPU adds/mins over full vregs, no
        # cross-lane (XLU) work inside the hot loop.
        sq3 = sq.reshape(chunk_rows // SUBLANE, SUBLANE, LANE)
        pm3 = p.reshape(chunk_rows // SUBLANE, SUBLANE, LANE)
        sum_ref[0] += jnp.sum(sq3, axis=0)
        min_ref[0] = jnp.minimum(min_ref[0], jnp.min(pm3, axis=0))
        return carry

    lax.fori_loop(0, num_chunks, body, 0)


def custom_loss(pred, actual):
    """Pallas implementation of CustomLoss.forward. Returns a scalar f32."""
    assert pred.shape == actual.shape
    n_total = pred.size
    if n_total == 0:
        return jnp.float32(jnp.nan)  # matches mean over empty tensors

    itemsize = jnp.dtype(pred.dtype).itemsize
    sublane_pack = max(SUBLANE, 32 // max(itemsize, 1))  # f32:8 bf16:16 i8:32

    rows_total = pl.cdiv(n_total, LANE)
    padded_elems = rows_total * LANE

    def to_slab(x):
        x = x.reshape(-1)
        if padded_elems != n_total:
            # Only lane-ragged sizes (numel % 128 != 0) pay a pad copy.  The
            # zero pads are branch-safe: zero diff for SSE, 0.0 > THRESHOLD.
            # TODO(synk): fully copy-free handling of lane-ragged sizes.
            x = jnp.pad(x, (0, padded_elems - x.size))
        return x.reshape(rows_total, LANE)

    # Row block: ~TARGET_BLOCK_BYTES per input per grid step, shrunk for small
    # inputs, rounded to the dtype sublane pack / chunk granularity.
    block_rows = min(TARGET_BLOCK_BYTES // (LANE * itemsize),
                     _round_up(pl.cdiv(rows_total, NUM_CORE_SPLITS),
                               sublane_pack))
    block_rows = max(block_rows, sublane_pack)
    if block_rows > CHUNK_ROWS:
        block_rows = _round_up(block_rows, CHUNK_ROWS)
        chunk_rows = CHUNK_ROWS
    else:
        chunk_rows = block_rows
    num_chunks = block_rows // chunk_rows

    steps_per_core = pl.cdiv(rows_total, NUM_CORE_SPLITS * block_rows)
    last_block = pl.cdiv(rows_total, block_rows) - 1
    needs_mask = (rows_total % (NUM_CORE_SPLITS * block_rows)) != 0

    def in_index_map(c, i):
        # Clamp so the DMA'd block always overlaps the slab (wholly-OOB logical
        # blocks re-read the last block and are fully masked in-kernel).
        return (jnp.minimum(c * steps_per_core + i, last_block), 0)

    kernel = functools.partial(
        _loss_kernel,
        rows_total=rows_total, block_rows=block_rows, chunk_rows=chunk_rows,
        num_chunks=num_chunks, steps_per_core=steps_per_core,
        needs_mask=needs_mask)

    sum_parts, min_parts = pl.pallas_call(
        kernel,
        out_shape=(
            jax.ShapeDtypeStruct((NUM_CORE_SPLITS, SUBLANE, LANE), jnp.float32),
            jax.ShapeDtypeStruct((NUM_CORE_SPLITS, SUBLANE, LANE), jnp.float32),
        ),
        grid=(NUM_CORE_SPLITS, steps_per_core),
        in_specs=[
            pl.BlockSpec((block_rows, LANE), in_index_map),
            pl.BlockSpec((block_rows, LANE), in_index_map),
        ],
        out_specs=(
            pl.BlockSpec((1, SUBLANE, LANE), lambda c, i: (c, 0, 0)),
            pl.BlockSpec((1, SUBLANE, LANE), lambda c, i: (c, 0, 0)),
        ),
        compiler_params=pltpu.CompilerParams(
            dimension_semantics=("parallel", "arbitrary"),
            vmem_limit_bytes=VMEM_LIMIT_BYTES),
    )(to_slab(pred), to_slab(actual))

    # Tiny final combine (2 x 8 x 128 partials) + penalty branch in XLA.
    sse = jnp.sum(sum_parts)
    pmin = jnp.min(min_parts)
    mse = sse / jnp.float32(n_total)
    return jnp.where(pmin < THRESHOLD, mse * PENALTY, mse)


def _reference(pred, actual):
    pred = pred.astype(jnp.float32)
    actual = actual.astype(jnp.float32)
    mse = jnp.mean((pred - actual) ** 2)
    return jnp.where(jnp.min(pred) < THRESHOLD, mse * PENALTY, mse)


if __name__ == "__main__":
    key = jax.random.PRNGKey(0)
    k1, k2, k3, k4 = jax.random.split(key, 4)

    # NCHW-shaped predictions / targets: (batch=2, channels=4, 16, 16)
    pred = jax.random.normal(k1, (2, 4, 16, 16), dtype=jnp.float32) * 10.0
    actual = jax.random.normal(k2, (2, 4, 16, 16), dtype=jnp.float32) * 10.0

    # Case 1: no penalty branch (lane-aligned, zero-copy path).
    loss1 = jax.block_until_ready(custom_loss(pred, actual))
    ref1 = _reference(pred, actual)
    assert jnp.allclose(loss1, ref1, rtol=1e-5, atol=1e-5), (loss1, ref1)

    # Case 2: force min(pred) < -300 to exercise the penalty branch.
    pred_pen = pred.at[0, 0, 0, 0].set(-500.0)
    loss2 = jax.block_until_ready(custom_loss(pred_pen, actual))
    ref2 = _reference(pred_pen, actual)
    assert jnp.allclose(loss2, ref2, rtol=1e-5, atol=1e-5), (loss2, ref2)

    # Case 3: odd size (lane-ragged tail + in-kernel row masking) + bf16.
    pred_odd = (jax.random.normal(k3, (3, 5, 7), dtype=jnp.float32) * 10.0
                ).astype(jnp.bfloat16)
    actual_odd = (jax.random.normal(k4, (3, 5, 7), dtype=jnp.float32) * 10.0
                  ).astype(jnp.bfloat16)
    loss3 = jax.block_until_ready(custom_loss(pred_odd, actual_odd))
    ref3 = _reference(pred_odd, actual_odd)
    assert jnp.allclose(loss3, ref3, rtol=1e-3, atol=1e-3), (loss3, ref3)

    print("KERNEL_OK")
</pallas_src>

<mosaic_0001>
module attributes {stable_mosaic.version = 11 : i64} {
  func.func @_loss_kernel(%arg0: i32, %arg1: i32, %arg2: memref<8x128xf32, #tpu.memory_space<vmem>>, %arg3: memref<8x128xf32, #tpu.memory_space<vmem>>, %arg4: memref<1x8x128xf32, #tpu.memory_space<vmem>>, %arg5: memref<1x8x128xf32, #tpu.memory_space<vmem>>) attributes {dimension_semantics = [#tpu.dimension_semantics<parallel>, #tpu.dimension_semantics<arbitrary>], iteration_bounds = array<i64: 2, 1>, scalar_prefetch = 0 : i64, scratch_operands = 0 : i64, tpu.core_type = #tpu.core_type<tc>, window_params = [{transform_indices = @transform_0, window_bounds = array<i64: 8, 128>}, {transform_indices = @transform_1, window_bounds = array<i64: 8, 128>}, {transform_indices = @transform_2, window_bounds = array<i64: 1, 8, 128>}, {transform_indices = @transform_3, window_bounds = array<i64: 1, 8, 128>}]} {
    %c0_i32 = arith.constant 0 : i32
    %0 = arith.cmpi eq, %arg1, %c0_i32 : i32
    %1 = arith.extui %0 : i1 to i32
    %c0_i32_0 = arith.constant 0 : i32
    %2 = arith.cmpi ne, %1, %c0_i32_0 : i32
    scf.if %2 {
      %cst_16 = arith.constant 0.000000e+00 : f32
      %27 = vector.broadcast %cst_16 : f32 to vector<1x8x128xf32>
      %c0_17 = arith.constant 0 : index
      %c0_18 = arith.constant 0 : index
      %c0_19 = arith.constant 0 : index
      %28 = vector.load %arg4[%c0_17, %c0_18, %c0_19] : memref<1x8x128xf32, #tpu.memory_space<vmem>>, vector<1x8x128xf32>
      tpu.vector_store %arg4[%c0_17, %c0_18, %c0_19], %27 {strides = array<i32>} : memref<1x8x128xf32, #tpu.memory_space<vmem>>, vector<1x8x128xf32>,
      %cst_20 = arith.constant 0x7F800000 : f32
      %29 = vector.broadcast %cst_20 : f32 to vector<1x8x128xf32>
      %c0_21 = arith.constant 0 : index
      %c0_22 = arith.constant 0 : index
      %c0_23 = arith.constant 0 : index
      %30 = vector.load %arg5[%c0_21, %c0_22, %c0_23] : memref<1x8x128xf32, #tpu.memory_space<vmem>>, vector<1x8x128xf32>
      tpu.vector_store %arg5[%c0_21, %c0_22, %c0_23], %29 {strides = array<i32>} : memref<1x8x128xf32, #tpu.memory_space<vmem>>, vector<1x8x128xf32>,
    } else {
    }
    %c0_i32_1 = arith.constant 0 : i32
    %c8_i32 = arith.constant 8 : i32
    %3 = arith.muli %c0_i32_1, %c8_i32 : i32
    %4 = tpu.assume_multiple %3, 8 : i32
    %5 = arith.index_cast %4 : i32 to index
    %c0 = arith.constant 0 : index
    %6 = vector.load %arg2[%5, %c0] : memref<8x128xf32, #tpu.memory_space<vmem>>, vector<8x128xf32>
    %7 = arith.index_cast %4 : i32 to index
    %c0_2 = arith.constant 0 : index
    %8 = vector.load %arg3[%7, %c0_2] : memref<8x128xf32, #tpu.memory_space<vmem>>, vector<8x128xf32>
    %9 = arith.subf %6, %8 : vector<8x128xf32>
    %10 = arith.mulf %9, %9 : vector<8x128xf32>
    %11 = vector.shape_cast %10 : vector<8x128xf32> to vector<1x8x128xf32>
    %12 = vector.shape_cast %6 : vector<8x128xf32> to vector<1x8x128xf32>
    %c0_3 = arith.constant 0 : index
    %c0_4 = arith.constant 0 : index
    %c0_5 = arith.constant 0 : index
    %13 = vector.load %arg4[%c0_3, %c0_4, %c0_5] : memref<1x8x128xf32, #tpu.memory_space<vmem>>, vector<1x8x128xf32>
    %14 = vector.shape_cast %13 : vector<1x8x128xf32> to vector<8x128xf32>
    %cst = arith.constant dense<0.000000e+00> : vector<8x128xf32>
    %15 = vector.multi_reduction <add>, %11, %cst [0] : vector<1x8x128xf32> to vector<8x128xf32>
    %16 = arith.addf %14, %15 : vector<8x128xf32>
    %c0_6 = arith.constant 0 : index
    %c0_7 = arith.constant 0 : index
    %c0_8 = arith.constant 0 : index
    %17 = vector.load %arg4[%c0_6, %c0_7, %c0_8] : memref<1x8x128xf32, #tpu.memory_space<vmem>>, vector<1x8x128xf32>
    %18 = vector.shape_cast %17 : vector<1x8x128xf32> to vector<8x128xf32>
    %19 = vector.shape_cast %16 : vector<8x128xf32> to vector<1x8x128xf32>
    tpu.vector_store %arg4[%c0_6, %c0_7, %c0_8], %19 {strides = array<i32>} : memref<1x8x128xf32, #tpu.memory_space<vmem>>, vector<1x8x128xf32>,
    %c0_9 = arith.constant 0 : index
    %c0_10 = arith.constant 0 : index
    %c0_11 = arith.constant 0 : index
    %20 = vector.load %arg5[%c0_9, %c0_10, %c0_11] : memref<1x8x128xf32, #tpu.memory_space<vmem>>, vector<1x8x128xf32>
    %21 = vector.shape_cast %20 : vector<1x8x128xf32> to vector<8x128xf32>
    %cst_12 = arith.constant dense<0x7F800000> : vector<8x128xf32>
    %22 = vector.multi_reduction <minimumf>, %12, %cst_12 [0] : vector<1x8x128xf32> to vector<8x128xf32>
    %23 = arith.minimumf %21, %22 : vector<8x128xf32>
    %c0_13 = arith.constant 0 : index
    %c0_14 = arith.constant 0 : index
    %c0_15 = arith.constant 0 : index
    %24 = vector.load %arg5[%c0_13, %c0_14, %c0_15] : memref<1x8x128xf32, #tpu.memory_space<vmem>>, vector<1x8x128xf32>
    %25 = vector.shape_cast %24 : vector<1x8x128xf32> to vector<8x128xf32>
    %26 = vector.shape_cast %23 : vector<8x128xf32> to vector<1x8x128xf32>
    tpu.vector_store %arg5[%c0_13, %c0_14, %c0_15], %26 {strides = array<i32>} : memref<1x8x128xf32, #tpu.memory_space<vmem>>, vector<1x8x128xf32>,
    %c1_i32 = arith.constant 1 : i32
    return
  }
  func.func @transform_0(%arg0: i32, %arg1: i32) -> (i32, i32) {
    %c1_i32 = arith.constant 1 : i32
    %0 = arith.muli %arg0, %c1_i32 : i32
    %1 = arith.addi %0, %arg1 : i32
    %c1_i32_0 = arith.constant 1 : i32
    %2 = arith.minsi %1, %c1_i32_0 : i32
    %c0_i32 = arith.constant 0 : i32
    %c0_i32_1 = arith.constant 0 : i32
    return %2, %c0_i32 : i32, i32
  }
  func.func @transform_1(%arg0: i32, %arg1: i32) -> (i32, i32) {
    %c1_i32 = arith.constant 1 : i32
    %0 = arith.muli %arg0, %c1_i32 : i32
    %1 = arith.addi %0, %arg1 : i32
    %c1_i32_0 = arith.constant 1 : i32
    %2 = arith.minsi %1, %c1_i32_0 : i32
    %c0_i32 = arith.constant 0 : i32
    %c0_i32_1 = arith.constant 0 : i32
    return %2, %c0_i32 : i32, i32
  }
  func.func @transform_2(%arg0: i32, %arg1: i32) -> (i32, i32, i32) {
    %c0_i32 = arith.constant 0 : i32
    %c0_i32_0 = arith.constant 0 : i32
    %c0_i32_1 = arith.constant 0 : i32
    return %arg0, %c0_i32, %c0_i32_0 : i32, i32, i32
  }
  func.func @transform_3(%arg0: i32, %arg1: i32) -> (i32, i32, i32) {
    %c0_i32 = arith.constant 0 : i32
    %c0_i32_0 = arith.constant 0 : i32
    %c0_i32_1 = arith.constant 0 : i32
    return %arg0, %c0_i32, %c0_i32_0 : i32, i32, i32
  }
}

</mosaic_0001>

<bundles_post_ra>
// kernel: tpu_custom_call.1
= control target key start
LH: loop header
LB: loop body
LE: loop exit
PB: predicated region body
PF: predicated region fallthrough
CT: control target
= control target key end

     0   :  { %s981_s0 = inlined_call_operand.hbm [shape: f32[16,128], index: 0, kind: input, shape index: {}]   ;;  %s982_s1 = inlined_call_operand.hbm [shape: f32[16,128], index: 1, kind: input, shape index: {}]   ;;  %s983_s2 = inlined_call_operand.hbm [shape: f32[2,8,128], index: 2, kind: output, shape index: {0}]   ;;  %s984_s3 = inlined_call_operand.hbm [shape: f32[2,8,128], index: 3, kind: output, shape index: {1}]  }
   0x1   :  { %987 = sst [smem:[#allocation17_spill]] %s981_s0 }
   0x2   :  { %9 = vsyncpa [#allocation3], 0 }
   0x3   :  { %11 = vsyncpa [#allocation3 + $0x1], 0 }
   0x4   :  { %12 = vsyncpa [#allocation6], 0 }
   0x5   :  { %14 = vsyncpa [#allocation6 + $0x1], 0 }
   0x6   :  { %15 = vsyncpa [#allocation4], 0 }
   0x7   :  { %17 = vsyncpa [#allocation4 + $0x1], 0 }
   0x8   :  { %18 = vsyncpa [#allocation9], 0 }
   0x9   :  { %20 = vsyncpa [#allocation9 + $0x1], 0  ;;  %s801_s12 = smov 0   ;;  %s803_s13 = smov 0  }
   0xa   :  { %s805_s14 = smov 0   ;;  %s807_s15 = smov 0  }
   0xb   :  { %s809_s16 = smov 0   ;;  %s811_s17 = smov 0  }
   0xc   :  { %s813_s18 = smov 0   ;;  %s815_s19 = smov 0  }
   0xd   :  { %s817_s20 = smov 0  }
   0xe LB: > { %988 = sst [smem:[#allocation14_spill]] %s775_s19  ;;  %s460_s21 = sadd.s32 4294967295, %s779_s20   ;;  %s779_s20 = sphi %s817_s20, %s26_s20   ;;  %s775_s19 = sphi %s815_s19, %s998_s19   ;;  %s771_s18 = sphi %s813_s18, %s997_s18   ;;  %s767_s17 = sphi %s811_s17, %s1004_s17   ;;  %s763_s16 = sphi %s809_s16, %s1003_s16   ;;  %s759_s15 = sphi %s807_s15, %s1002_s15   ;;  %s755_s14 = sphi %s805_s14, %s1001_s14   ;;  %s751_s13 = sphi %s803_s13, %s1000_s13   ;;  %s747_s12 = sphi %s801_s12, %s999_s12  }
   0xf   : > { %s461_s22 = sadd.s32 4294967294, %s779_s20   ;;  %s38_s23 = sadd.s32 1, %s775_s19 }
  0x10   : > { %p43_p0 = scmp.lt.s32.totalorder %s775_s19, 1  ;;  %p40_p1 = scmp.ge.s32.totalorder %s38_s23, 2 }
  0x11   : > { %s51_s24 = sadd.s32 1, %s767_s17  ;;  %p58_p2 = scmp.ne.s32.totalorder %s767_s17, %s763_s16 }
  0x12   : > { %s850_s25 = scalar_select %p43_p0, %s775_s19, 1 }
  0x13   : > { %s1006_s23 = smov (%p40_p1, %s38_s23), 0  ;;  %p59_p3 = scmp.eq.s32.totalorder %s779_s20, 0 }
  0x14   : > { %989 = sst [smem:[#allocation15_spill]] %s1006_s23  ;;  %p46_p4 = scmp.lt.s32.totalorder %s1006_s23, 1 }
  0x15   : > { %p64_p5 = scmp.ne.s32.totalorder %s763_s16, %s759_s15  ;;  %p859_p6 = por %p59_p3, %p58_p2 }
  0x16   : > { %p65_p7 = scmp.eq.s32.totalorder %s460_s21, 0  ;;  %s106_s29 = ssub.s32 %s775_s19, %s1006_s23 }
  0x17   : > { %s47_s27 = scalar_select %p46_p4, %s1006_s23, 1 }
  0x18   : > { %p864_p8 = por %p65_p7, %p64_p5  ;;  %p107_p9 = scmp.eq.s32.totalorder %s106_s29, 0 }
  0x19   : > { %s48_s30 = ssub.s32 %s850_s25, %s47_s27  ;;  %s109_s4 = sadd.s32 1, %s755_s14 }
  0x1a   : > { %p49_p10 = scmp.eq.s32.totalorder %s48_s30, 0  ;;  %p119_p11 = scmp.ne.s32.totalorder %s755_s14, %s751_s13 }
  0x1b   : > { %s873_s5 = scalar_select %p107_p9, %s755_s14, %s109_s4  }
  0x1c   : > { %s876_s6 = scalar_select %p49_p10, %s767_s17, %s51_s24  }
  0x1d   : > { %p120_p12 = scmp.eq.s32.totalorder %s460_s21, 1  ;;  %p125_p13 = scmp.ne.s32.totalorder %s751_s13, %s747_s12 }
  0x1e   : > { %992 = sst [smem:[#allocation16_spill]] %s876_s6  ;;  %p126_p0 = scmp.eq.s32.totalorder %s461_s22, 1 }
  0x1f   : > { %p882_p1 = por %p120_p12, %p119_p11  ;;  %p463_p2 = scmp.ge.s32.totalorder %s779_s20, 2 }
  0x20   : > { %p887_p3 = por %p126_p0, %p125_p13  ;;  %p501_p4 = scmp.lt.s32.totalorder %s779_s20, 2 }
  0x21   : > { %s172_s9 = sand.u32 1, %s767_s17   ;;  %s465_s10 = sshll.u32 %s850_s25, 3 }
  0x22   : > { %s464_s11 = sshll.u32 %s172_s9, 3  ;;  %s995_s0 = sld [smem:[#allocation17_spill]] }
  0x23   : > { %s176_s22 = scalar_lea.vmem [#allocation2], %s464_s11  ;;  %p488_p5 = pnand %p501_p4, %p859_p6 }
  0x24   : > { %s187_s29 = sshll.u32 %s176_s22, 4  ;;  %p468_p7 = scmp.ge.s32.totalorder %s779_s20, 1  ;;  %s188_s29 = int_to_ptr.vmem [resolvable:$true] %s187_s29 }
  0x25   : > { %p214_p9 = scmp.lt.s32.totalorder %s779_s20, 3  ;;  %s173_s30 = scalar_lea.sflag [#allocation3], %s172_s9 }
  0x26   : > { %s205_s25 = scalar_lea.hbm %s982_s1, %s465_s10  ;;  %s198_s6 = scalar_lea.vmem [#allocation5], %s464_s11 }
  0x27   : > { %p215_p10 = pnand %p468_p7, %p214_p9  ;;  %s207_s19 = sshll.u32 %s205_s25, 4  ;;  %s208_s19 = int_to_ptr.hbm [resolvable:$true] %s207_s19 }
  0x28   : > { %s183_s24 = scalar_lea.hbm %s995_s0, %s465_s10  ;;  %s209_s15 = sshll.u32 %s198_s6, 4  ;;  %s210_s15 = int_to_ptr.vmem [resolvable:$true] %s209_s15 }
  0x29   : > { %s185_s27 = sshll.u32 %s183_s24, 4  ;;  %s195_s21 = scalar_lea.sflag [#allocation6], %s172_s9  ;;  %s186_s27 = int_to_ptr.hbm [resolvable:$true] %s185_s27 }
  0x2a   : > { %490 = dma.hbm_to_vmem [thread:$0]  (!%p488_p5), %s186_s27, 128, %s188_s29, %s173_s30  }
  0x2b   : > { %493 = dma.hbm_to_vmem [thread:$0]  (!%p488_p5), %s208_s19, 128, %s210_s15, %s195_s21  }
  0x2c   : > { %218 = sbr.rel (%p215_p10) target bundleno = 82 (0x52), region = 28  ;;  %s220_s26 = sand.u32 (!%p215_p10), 1, %s763_s16  }
  0x2d   : > { %s469_s24 = sshll.u32 (!%p215_p10), %s220_s26, 3  ;;  %s221_s22 = scalar_lea.sflag (!%p215_p10), [#allocation3], %s220_s26 }
  0x2e   : > { %s224_s0 = scalar_lea.vmem (!%p215_p10), [#allocation2], %s469_s24 }
  0x31   : > { %730 = dma.done.wait (%p864_p8), %s221_s22, 128  }
  0x32   : > { %732 = vsyncadd (%p864_p8), %s221_s22, 4294967168  ;;  %s231_s23 = scalar_lea.sflag [#allocation6], %s220_s26  ;;  %s234_s10 = scalar_lea.vmem [#allocation5], %s469_s24 }
  0x33   : > { %734 = dma.done.wait (%p864_p8), %s231_s23, 128  }
  0x34   : > { %736 = vsyncadd (%p864_p8), %s231_s23, 4294967168  ;;  %s914_s19 = sand.u32 1, %s751_s13   ;;  %s475_s9 = sshll.u32 %s771_s18, 3  ;;  %v280_v0 = vld [vmem:[%s224_s0] sm:$0xff]  ;;  %v281_v1 = vld [vmem:[%s234_s10] sm:$0xff] }
  0x35   : > { %s471_s6 = sshll.u32 %s914_s19, 3  ;;  %s921_s29 = scalar_lea.hbm %s983_s2, %s475_s9  ;;  %v282_v2 = vsub.f32 %v280_v0, %v281_v1 }
  0x36   : > { %s321_s25 = scalar_lea.hbm %s984_s3, %s475_s9  ;;  %s267_s28 = scalar_lea.vmem [#allocation8], %s471_s6 }
  0x37   : > { %s323_s15 = sshll.u32 %s267_s28, 4  ;;  %s325_s21 = sshll.u32 %s321_s25, 4  ;;  %v283_v3 = vmul.f32 %v282_v2, %v282_v2  ;;  %290 = vst [vmem:[%s267_s28] sm:$0xff] %v280_v0  ;;  %s324_s15 = int_to_ptr.vmem [resolvable:$true] %s323_s15  ;;  %s326_s21 = int_to_ptr.hbm [resolvable:$true] %s325_s21 }
  0x38   : > { %s260_s18 = scalar_lea.vmem [#allocation7], %s471_s6  ;;  %s311_s24 = sshll.u32 %s921_s29, 4  ;;  %s312_s24 = int_to_ptr.hbm [resolvable:$true] %s311_s24 }
  0x39   : > { %s309_s26 = sshll.u32 %s260_s18, 4  ;;  %s297_s22 = scalar_lea.sflag [#allocation9], %s914_s19  ;;  %s310_s26 = int_to_ptr.vmem [resolvable:$true] %s309_s26 }
  0x3a   : > { %s651_s23 = sshra.s32 %s326_s21, 4  ;;  %s657_s10 = scalar_lea.hbm %s984_s3, 16  ;;  %s652_s23 = int_to_ptr.hbm [resolvable:$true] %s651_s23 }
  0x3b   : > { %s653_s11 = scalar_lea.hbm %s652_s23, 8  ;;  %p658_p12 = scmp.lt.s32.totalorder %s652_s23, %s984_s3 }
  0x3c   : > { %p654_p6 = scmp.ne.s32.totalorder %s652_s23, %s653_s11  ;;  %p659_p13 = scmp.lt.s32.totalorder %s657_s10, %s653_s11 }
  0x3e   : > { %p655_p8 = pnand %p654_p6, %p882_p1  ;;  %p660_p0 = por %p659_p13, %p658_p12 }
  0x40   : > { %p656_p11 = pneg %p655_p8 }
  0x42   : > { %p661_p4 = pnand %p660_p0, %p656_p11 }
  0x44   : > { %664 = shalt.err (!%p661_p4)
}
  0x45   : > { %484 = dma.vmem_to_hbm [thread:$0]  (%p882_p1), %s324_s15, 128, %s326_s21, %s297_s22   ;;  %287 = vst [vmem:[%s260_s18] sm:$0xff] %v283_v3 }
  0x46   : > { %s292_s6 = scalar_lea.sflag [#allocation4], %s914_s19  ;;  %s679_s29 = sshra.s32 %s312_s24, 4  ;;  %s680_s29 = int_to_ptr.hbm [resolvable:$true] %s679_s29 }
  0x47   : > { %s681_s4 = scalar_lea.hbm %s680_s29, 8  ;;  %s685_s23 = scalar_lea.hbm %s983_s2, 16 }
  0x48   : > { %p682_p5 = scmp.ne.s32.totalorder %s680_s29, %s681_s4  ;;  %p686_p10 = scmp.lt.s32.totalorder %s680_s29, %s983_s2 }
  0x49   : > { %p687_p6 = scmp.lt.s32.totalorder %s685_s23, %s681_s4 }
  0x4a   : > { %p683_p7 = pnand %p682_p5, %p882_p1 }
  0x4b   : > { %p688_p8 = por %p687_p6, %p686_p10 }
  0x4c   : > { %p684_p9 = pneg %p683_p7 }
  0x4e   : > { %p689_p11 = pnand %p688_p8, %p684_p9 }
  0x50   : > { %692 = shalt.err (!%p689_p11)
}
  0x51   : > { %483 = dma.vmem_to_hbm [thread:$0]  (%p882_p1), %s310_s26, 128, %s312_s24, %s292_s6  }
  0x52 PF: > { %s337_s19 = sand.u32 1, %s747_s12   ;;  %p495_p12 = pnand %p463_p2, %p887_p3 }
  0x53   : > { %s338_s15 = scalar_lea.sflag [#allocation4], %s337_s19 }
  0x54   : > { %p496_p13 = pneg %p495_p12 }
  0x56   : > { %738 = dma.done.wait (%p496_p13), %s338_s15, 128  }
  0x57   : > { %740 = vsyncadd (%p496_p13), %s338_s15, 4294967168  ;;  %s348_s21 = scalar_lea.sflag [#allocation9], %s337_s19 }
  0x58   : > { %742 = dma.done.wait (%p496_p13), %s348_s21, 128  }
  0x59   : > { %744 = vsyncadd (%p496_p13), %s348_s21, 4294967168  ;;  %s26_s20 = sadd.s32 1, %s779_s20   ;;  %s996_s7 = sld [smem:[#allocation16_spill]] }
  0x5a   : > { %p23_p0 = scmp.ge.s32.totalorder %s26_s20, 4   ;;  %s997_s18 = sld [smem:[#allocation14_spill]] }
  0x5b   : > { %s998_s19 = sld [smem:[#allocation15_spill]]  ;;  %s999_s12 = smov %s751_s13 }
  0x5c   : > { %s1000_s13 = smov %s755_s14  ;;  %s1001_s14 = smov %s873_s5 }
  0x5d   : > { %s1002_s15 = smov %s763_s16  ;;  %s1003_s16 = smov %s767_s17 }
  0x5e   :  { %25 = sbr.rel (!%p23_p0) target bundleno = 14 (0xe), region = 107 }
  0x5f   : > { %s1004_s17 = smov %s996_s7 }
  0x63   :  { %354 = vsyncpa [#allocation3], 1 }
  0x64   :  { %356 = vsyncpa [#allocation3 + $0x1], 1 }
  0x65   :  { %357 = vsyncpa [#allocation6], 1 }
  0x66   :  { %359 = vsyncpa [#allocation6 + $0x1], 1 }
  0x67   :  { %360 = vsyncpa [#allocation4], 1 }
  0x68   :  { %362 = vsyncpa [#allocation4 + $0x1], 1 }
  0x69   :  { %363 = vsyncpa [#allocation9], 1 }
  0x6a   :  { %365 = vsyncpa [#allocation9 + $0x1], 1 }

</bundles_post_ra>
